<compile_context>
chip_gen: v7x
topology: tpu7x:2x2x1
jax: 0.10.0
libtpu: 0.0.40
codegen_flags: <defaults>
</compile_context>

<pallas_src>
import math

import jax
import jax.numpy as jnp
from jax import lax
from jax.experimental import pallas as pl
from jax.experimental.pallas import tpu as pltpu


def _make_arcface_kernel(scale, margin, *, tile_c, num_classes, batch):
    cos_m = math.cos(margin)
    sin_m = math.sin(margin)
    needs_mask = (num_classes % tile_c) != 0   # partial last C tile?

    def kernel(f_ref, w_ref, t_ref, loss_ref, m_ref, l_ref, tgt_ref):
        c = pl.program_id(0)
        nc = pl.num_programs(0)

        @pl.when(c == 0)
        def _init():
            m_ref[...] = jnp.full_like(m_ref, -jnp.inf)
            l_ref[...] = jnp.zeros_like(l_ref)
            tgt_ref[...] = jnp.zeros_like(tgt_ref)

        f = f_ref[...]                       # (B, E)       f32
        w = w_ref[...]                       # (tile_c, E)  f32, PyTorch row layout
        t = t_ref[...]                       # (B, 1)       i32

        # Row L2-normalization of this weight tile:
        # 1/max(||w||, 1e-12) == rsqrt(max(sum_sq, 1e-24)); rsqrt -> EUP slot.
        sum_sq = jnp.sum(w * w, axis=1, keepdims=True)           # (tile_c, 1)
        w_n = w * lax.rsqrt(jnp.maximum(sum_sq, 1e-24))          # (tile_c, E)

        # cos_theta tile = features @ w_n.T as one NT dot_general on the MXU
        # (no wrapper transpose, no separate in-kernel transpose op).
        cos = lax.dot_general(f, w_n, (((1,), (1,)), ((), ())),
                              preferred_element_type=jnp.float32)  # (B, tile_c)
        cos = jnp.clip(cos, -1.0 + 1e-7, 1.0 - 1e-7)

        # one_hot via a single broadcast compare against the global class index.
        lo = c * tile_c
        col = lo + lax.broadcasted_iota(jnp.int32, (batch, tile_c), 1)
        onehot = col == t                                        # (B, tile_c)

        # Margin applied only on the (B, 1) target column; cos already clipped
        # so the sqrt argument stays strictly positive (no NaN).
        tgt_cos = jnp.sum(jnp.where(onehot, cos, 0.0), axis=1, keepdims=True)
        adj = tgt_cos * cos_m - jnp.sqrt(1.0 - tgt_cos * tgt_cos) * sin_m
        has_tgt = jnp.logical_and(t >= lo, t < lo + tile_c)       # (B, 1)
        tgt_ref[...] += jnp.where(has_tgt, scale * adj, 0.0)

        logits = jnp.where(onehot, adj, cos) * scale              # (B, tile_c)
        if needs_mask:
            # Padded lanes of a partial last tile must not enter the softmax.
            logits = jnp.where(col < num_classes, logits, -jnp.inf)

        # Online log-sum-exp update.
        m_prev = m_ref[...]
        m_new = jnp.maximum(m_prev, jnp.max(logits, axis=1, keepdims=True))
        alpha = jnp.exp(m_prev - m_new)                           # 0 at c == 0
        l_ref[...] = alpha * l_ref[...] + jnp.sum(jnp.exp(logits - m_new),
                                                  axis=1, keepdims=True)
        m_ref[...] = m_new

        @pl.when(c == nc - 1)
        def _finalize():
            lse = m_ref[...] + jnp.log(l_ref[...])                # (B, 1)
            loss_ref[0, 0] = jnp.sum(lse - tgt_ref[...]) * (1.0 / batch)

    return kernel


def _choose_tile_c(num_classes, emb, budget_bytes=4 << 20):
    """Class-tile size: one f32 (tile_c, E) weight buffer <= ~4 MiB so the
    double-buffered pipeline fits under every generation's default scoped VMEM
    (v5e 16 MiB, v6e 32 MiB, v7x 64 MiB physical)."""
    tc = max(128, (budget_bytes // (4 * emb)) // 128 * 128)
    if num_classes <= tc:
        return num_classes          # single full-extent tile (always legal)
    return tc


def arcface_loss2(features, weights, targets, *, scale=64.0, margin=0.7):
    """features: (B, E) f32; weights: (C, E) f32 (PyTorch layout); targets: (B,)."""
    B, E = features.shape
    C, E2 = weights.shape
    assert E == E2
    targets_2d = targets.astype(jnp.int32).reshape(B, 1)

    tile_c = _choose_tile_c(C, E)
    grid_c = pl.cdiv(C, tile_c)

    kernel = _make_arcface_kernel(float(scale), float(margin),
                                  tile_c=tile_c, num_classes=C, batch=B)

    out = pl.pallas_call(
        kernel,
        out_shape=jax.ShapeDtypeStruct((1, 1), jnp.float32),
        grid_spec=pltpu.PrefetchScalarGridSpec(
            num_scalar_prefetch=0,
            grid=(grid_c,),
            in_specs=[
                pl.BlockSpec((B, E), lambda c: (0, 0)),        # features (resident)
                pl.BlockSpec((tile_c, E), lambda c: (c, 0)),   # weight C tile
                pl.BlockSpec((B, 1), lambda c: (0, 0)),        # targets (resident)
            ],
            out_specs=pl.BlockSpec(memory_space=pltpu.MemorySpace.SMEM),
            scratch_shapes=[
                pltpu.VMEM((B, 1), jnp.float32),   # running max  m
                pltpu.VMEM((B, 1), jnp.float32),   # running sum  l
                pltpu.VMEM((B, 1), jnp.float32),   # scale * adjusted target logit
            ],
        ),
        compiler_params=pltpu.CompilerParams(
            dimension_semantics=("arbitrary",)),   # C axis carries accumulators
    )(features, weights, targets_2d)
    return out[0, 0]


def _reference(features, weights, targets, *, scale=64.0, margin=0.7):
    # Pure-JAX reference mirroring the PyTorch code (with acos/cos).
    w_n = weights / jnp.maximum(
        jnp.linalg.norm(weights, axis=1, keepdims=True), 1e-12)
    cos_theta = features @ w_n.T
    cos_theta = jnp.clip(cos_theta, -1.0 + 1e-7, 1.0 - 1e-7)
    arc = jnp.arccos(cos_theta)
    M = jax.nn.one_hot(targets, weights.shape[0]) * margin
    logits = jnp.cos(arc + M) * scale
    logp = jax.nn.log_softmax(logits, axis=-1)
    return -jnp.mean(jnp.take_along_axis(logp, targets[:, None], axis=1))


if __name__ == "__main__":
    embedding_size = 32
    class_num = 128
    batch = 8
    scale = 64.0
    margin = 0.7

    key = jax.random.PRNGKey(0)
    kf, kw, kt = jax.random.split(key, 3)

    features = jax.random.normal(kf, (batch, embedding_size), dtype=jnp.float32)

    # xavier_normal_ for a (class_num, embedding_size) parameter:
    # std = sqrt(2 / (fan_in + fan_out)) = sqrt(2 / (embedding_size + class_num))
    xavier_std = math.sqrt(2.0 / (embedding_size + class_num))
    weights = xavier_std * jax.random.normal(
        kw, (class_num, embedding_size), dtype=jnp.float32)

    targets = jax.random.randint(kt, (batch,), 0, class_num, dtype=jnp.int32)

    loss = arcface_loss2(features, weights, targets, scale=scale, margin=margin)
    loss = jax.block_until_ready(loss)

    ref = _reference(features, weights, targets, scale=scale, margin=margin)
    assert jnp.allclose(loss, ref, rtol=1e-4, atol=1e-4), (loss, ref)

    print("KERNEL_OK")
</pallas_src>

<mosaic_0001>
module attributes {stable_mosaic.version = 11 : i64} {
  func.func @kernel(%arg0: i32, %arg1: memref<8x32xf32, #tpu.memory_space<vmem>>, %arg2: memref<128x32xf32, #tpu.memory_space<vmem>>, %arg3: memref<8x1xi32, #tpu.memory_space<vmem>>, %arg4: memref<1x1xf32, #tpu.memory_space<smem>>, %arg5: memref<8x1xf32, #tpu.memory_space<vmem>>, %arg6: memref<8x1xf32, #tpu.memory_space<vmem>>, %arg7: memref<8x1xf32, #tpu.memory_space<vmem>>) attributes {dimension_semantics = [#tpu.dimension_semantics<arbitrary>], iteration_bounds = array<i64: 1>, scalar_prefetch = 0 : i64, scratch_operands = 3 : i64, tpu.core_type = #tpu.core_type<tc>, window_params = [{pipeline_mode = #tpu.pipeline_mode<synchronous>, transform_indices = @transform_0, window_bounds = array<i64: 8, 32>}, {transform_indices = @transform_1, window_bounds = array<i64: 128, 32>}, {pipeline_mode = #tpu.pipeline_mode<synchronous>, transform_indices = @transform_2, window_bounds = array<i64: 8, 1>}, {transform_indices = @transform_3, window_bounds = array<i64: 1, 1>}]} {
    %c0_i32 = arith.constant 0 : i32
    %0 = arith.cmpi eq, %arg0, %c0_i32 : i32
    %1 = arith.extui %0 : i1 to i32
    %c0_i32_0 = arith.constant 0 : i32
    %2 = arith.cmpi ne, %1, %c0_i32_0 : i32
    scf.if %2 {
      %cst_35 = arith.constant 0xFF800000 : f32
      %75 = vector.broadcast %cst_35 : f32 to vector<8x1xf32>
      %c0_36 = arith.constant 0 : index
      %c0_37 = arith.constant 0 : index
      %76 = vector.load %arg5[%c0_36, %c0_37] : memref<8x1xf32, #tpu.memory_space<vmem>>, vector<8x1xf32>
      tpu.vector_store %arg5[%c0_36, %c0_37], %75 {strides = array<i32>} : memref<8x1xf32, #tpu.memory_space<vmem>>, vector<8x1xf32>,
      %cst_38 = arith.constant 0.000000e+00 : f32
      %77 = vector.broadcast %cst_38 : f32 to vector<8x1xf32>
      %c0_39 = arith.constant 0 : index
      %c0_40 = arith.constant 0 : index
      %78 = vector.load %arg6[%c0_39, %c0_40] : memref<8x1xf32, #tpu.memory_space<vmem>>, vector<8x1xf32>
      tpu.vector_store %arg6[%c0_39, %c0_40], %77 {strides = array<i32>} : memref<8x1xf32, #tpu.memory_space<vmem>>, vector<8x1xf32>,
      %cst_41 = arith.constant 0.000000e+00 : f32
      %79 = vector.broadcast %cst_41 : f32 to vector<8x1xf32>
      %c0_42 = arith.constant 0 : index
      %c0_43 = arith.constant 0 : index
      %80 = vector.load %arg7[%c0_42, %c0_43] : memref<8x1xf32, #tpu.memory_space<vmem>>, vector<8x1xf32>
      tpu.vector_store %arg7[%c0_42, %c0_43], %79 {strides = array<i32>} : memref<8x1xf32, #tpu.memory_space<vmem>>, vector<8x1xf32>,
    } else {
    }
    %c0 = arith.constant 0 : index
    %c0_1 = arith.constant 0 : index
    %3 = vector.load %arg1[%c0, %c0_1] : memref<8x32xf32, #tpu.memory_space<vmem>>, vector<8x32xf32>
    %c0_2 = arith.constant 0 : index
    %c0_3 = arith.constant 0 : index
    %4 = vector.load %arg2[%c0_2, %c0_3] : memref<128x32xf32, #tpu.memory_space<vmem>>, vector<128x32xf32>
    %c0_4 = arith.constant 0 : index
    %c0_5 = arith.constant 0 : index
    %5 = vector.load %arg3[%c0_4, %c0_5] : memref<8x1xi32, #tpu.memory_space<vmem>>, vector<8x1xi32>
    %6 = arith.mulf %4, %4 : vector<128x32xf32>
    %cst = arith.constant dense<0.000000e+00> : vector<128xf32>
    %7 = vector.multi_reduction <add>, %6, %cst [1] : vector<128x32xf32> to vector<128xf32>
    %8 = vector.shape_cast %7 : vector<128xf32> to vector<128x1xf32>
    %cst_6 = arith.constant 1.000000e-24 : f32
    %9 = vector.broadcast %cst_6 : f32 to vector<128x1xf32>
    %10 = arith.maximumf %8, %9 : vector<128x1xf32>
    %11 = math.rsqrt %10 : vector<128x1xf32>
    %12 = vector.broadcast %11 : vector<128x1xf32> to vector<128x32xf32>
    %13 = arith.mulf %4, %12 : vector<128x32xf32>
    %cst_7 = arith.constant dense<0.000000e+00> : vector<8x128xf32>
    %14 = tpu.matmul %3, %13, %cst_7 {dimension_numbers = #tpu.dot_dimension_numbers<[1], [1], [0], [0], [0, 0, 1, 0], [], []>} : vector<8x32xf32>, vector<128x32xf32>, vector<8x128xf32> -> vector<8x128xf32>
    %cst_8 = arith.constant -0.99999988 : f32
    %cst_9 = arith.constant 0.99999988 : f32
    %15 = vector.broadcast %cst_8 : f32 to vector<8x128xf32>
    %16 = arith.maximumf %15, %14 : vector<8x128xf32>
    %17 = vector.broadcast %cst_9 : f32 to vector<8x128xf32>
    %18 = arith.minimumf %17, %16 : vector<8x128xf32>
    %c128_i32 = arith.constant 128 : i32
    %19 = arith.muli %arg0, %c128_i32 : i32
    %20 = tpu.iota {dimensions = array<i32: 1>} : vector<8x128xi32>
    %21 = vector.broadcast %19 : i32 to vector<8x128xi32>
    %22 = arith.addi %21, %20 : vector<8x128xi32>
    %23 = vector.broadcast %5 : vector<8x1xi32> to vector<8x128xi32>
    %24 = arith.cmpi eq, %22, %23 : vector<8x128xi32>
    %cst_10 = arith.constant 0.000000e+00 : f32
    %25 = vector.broadcast %cst_10 : f32 to vector<8x128xf32>
    %26 = arith.select %24, %18, %25 : vector<8x128xi1>, vector<8x128xf32>
    %cst_11 = arith.constant dense<0.000000e+00> : vector<8xf32>
    %27 = vector.multi_reduction <add>, %26, %cst_11 [1] : vector<8x128xf32> to vector<8xf32>
    %28 = vector.shape_cast %27 : vector<8xf32> to vector<8x1xf32>
    %cst_12 = arith.constant 0.764842212 : f32
    %29 = vector.broadcast %cst_12 : f32 to vector<8x1xf32>
    %30 = arith.mulf %28, %29 : vector<8x1xf32>
    %31 = arith.mulf %28, %28 : vector<8x1xf32>
    %cst_13 = arith.constant 1.000000e+00 : f32
    %32 = vector.broadcast %cst_13 : f32 to vector<8x1xf32>
    %33 = arith.subf %32, %31 : vector<8x1xf32>
    %34 = math.sqrt %33 : vector<8x1xf32>
    %cst_14 = arith.constant 0.644217669 : f32
    %35 = vector.broadcast %cst_14 : f32 to vector<8x1xf32>
    %36 = arith.mulf %34, %35 : vector<8x1xf32>
    %37 = arith.subf %30, %36 : vector<8x1xf32>
    %38 = vector.broadcast %19 : i32 to vector<8x1xi32>
    %39 = arith.cmpi sge, %5, %38 : vector<8x1xi32>
    %c128_i32_15 = arith.constant 128 : i32
    %40 = arith.addi %19, %c128_i32_15 : i32
    %41 = vector.broadcast %40 : i32 to vector<8x1xi32>
    %42 = arith.cmpi slt, %5, %41 : vector<8x1xi32>
    %43 = arith.andi %39, %42 : vector<8x1xi1>
    %c0_16 = arith.constant 0 : index
    %c0_17 = arith.constant 0 : index
    %44 = vector.load %arg7[%c0_16, %c0_17] : memref<8x1xf32, #tpu.memory_space<vmem>>, vector<8x1xf32>
    %cst_18 = arith.constant 6.400000e+01 : f32
    %45 = vector.broadcast %cst_18 : f32 to vector<8x1xf32>
    %46 = arith.mulf %45, %37 : vector<8x1xf32>
    %cst_19 = arith.constant 0.000000e+00 : f32
    %47 = vector.broadcast %cst_19 : f32 to vector<8x1xf32>
    %48 = arith.select %43, %46, %47 : vector<8x1xi1>, vector<8x1xf32>
    %49 = arith.addf %44, %48 : vector<8x1xf32>
    %c0_20 = arith.constant 0 : index
    %c0_21 = arith.constant 0 : index
    %50 = vector.load %arg7[%c0_20, %c0_21] : memref<8x1xf32, #tpu.memory_space<vmem>>, vector<8x1xf32>
    tpu.vector_store %arg7[%c0_20, %c0_21], %49 {strides = array<i32>} : memref<8x1xf32, #tpu.memory_space<vmem>>, vector<8x1xf32>,
    %51 = vector.shape_cast %37 : vector<8x1xf32> to vector<8x1xf32>
    %52 = vector.broadcast %51 : vector<8x1xf32> to vector<8x128xf32>
    %53 = arith.select %24, %52, %18 : vector<8x128xi1>, vector<8x128xf32>
    %cst_22 = arith.constant 6.400000e+01 : f32
    %54 = vector.broadcast %cst_22 : f32 to vector<8x128xf32>
    %55 = arith.mulf %53, %54 : vector<8x128xf32>
    %c0_23 = arith.constant 0 : index
    %c0_24 = arith.constant 0 : index
    %56 = vector.load %arg5[%c0_23, %c0_24] : memref<8x1xf32, #tpu.memory_space<vmem>>, vector<8x1xf32>
    %cst_25 = arith.constant dense<0xFF800000> : vector<8xf32>
    %57 = vector.multi_reduction <maximumf>, %55, %cst_25 [1] : vector<8x128xf32> to vector<8xf32>
    %58 = vector.shape_cast %57 : vector<8xf32> to vector<8x1xf32>
    %59 = arith.maximumf %56, %58 : vector<8x1xf32>
    %60 = arith.subf %56, %59 : vector<8x1xf32>
    %61 = math.exp %60 : vector<8x1xf32>
    %c0_26 = arith.constant 0 : index
    %c0_27 = arith.constant 0 : index
    %62 = vector.load %arg6[%c0_26, %c0_27] : memref<8x1xf32, #tpu.memory_space<vmem>>, vector<8x1xf32>
    %63 = arith.mulf %61, %62 : vector<8x1xf32>
    %64 = vector.broadcast %59 : vector<8x1xf32> to vector<8x128xf32>
    %65 = arith.subf %55, %64 : vector<8x128xf32>
    %66 = math.exp %65 : vector<8x128xf32>
    %cst_28 = arith.constant dense<0.000000e+00> : vector<8xf32>
    %67 = vector.multi_reduction <add>, %66, %cst_28 [1] : vector<8x128xf32> to vector<8xf32>
    %68 = vector.shape_cast %67 : vector<8xf32> to vector<8x1xf32>
    %69 = arith.addf %63, %68 : vector<8x1xf32>
    %c0_29 = arith.constant 0 : index
    %c0_30 = arith.constant 0 : index
    %70 = vector.load %arg6[%c0_29, %c0_30] : memref<8x1xf32, #tpu.memory_space<vmem>>, vector<8x1xf32>
    tpu.vector_store %arg6[%c0_29, %c0_30], %69 {strides = array<i32>} : memref<8x1xf32, #tpu.memory_space<vmem>>, vector<8x1xf32>,
    %c0_31 = arith.constant 0 : index
    %c0_32 = arith.constant 0 : index
    %71 = vector.load %arg5[%c0_31, %c0_32] : memref<8x1xf32, #tpu.memory_space<vmem>>, vector<8x1xf32>
    tpu.vector_store %arg5[%c0_31, %c0_32], %59 {strides = array<i32>} : memref<8x1xf32, #tpu.memory_space<vmem>>, vector<8x1xf32>,
    %c0_i32_33 = arith.constant 0 : i32
    %72 = arith.cmpi eq, %arg0, %c0_i32_33 : i32
    %73 = arith.extui %72 : i1 to i32
    %c0_i32_34 = arith.constant 0 : i32
    %74 = arith.cmpi ne, %73, %c0_i32_34 : i32
    scf.if %74 {
      %c0_35 = arith.constant 0 : index
      %c0_36 = arith.constant 0 : index
      %75 = vector.load %arg5[%c0_35, %c0_36] : memref<8x1xf32, #tpu.memory_space<vmem>>, vector<8x1xf32>
      %c0_37 = arith.constant 0 : index
      %c0_38 = arith.constant 0 : index
      %76 = vector.load %arg6[%c0_37, %c0_38] : memref<8x1xf32, #tpu.memory_space<vmem>>, vector<8x1xf32>
      %77 = math.log %76 : vector<8x1xf32>
      %78 = arith.addf %75, %77 : vector<8x1xf32>
      %c0_39 = arith.constant 0 : index
      %c0_40 = arith.constant 0 : index
      %79 = vector.load %arg7[%c0_39, %c0_40] : memref<8x1xf32, #tpu.memory_space<vmem>>, vector<8x1xf32>
      %80 = arith.subf %78, %79 : vector<8x1xf32>
      %81 = vector.shape_cast %80 : vector<8x1xf32> to vector<1x8x1xf32>
      %cst_41 = arith.constant dense<0.000000e+00> : vector<1xf32>
      %82 = vector.multi_reduction <add>, %81, %cst_41 [1, 2] : vector<1x8x1xf32> to vector<1xf32>
      %83 = vector.shape_cast %82 : vector<1xf32> to vector<1x1x1xf32>
      %84 = vector.extract %83[0, 0, 0] : f32 from vector<1x1x1xf32>
      %cst_42 = arith.constant 1.250000e-01 : f32
      %85 = arith.mulf %84, %cst_42 : f32
      %c0_43 = arith.constant 0 : index
      %c0_44 = arith.constant 0 : index
      %86 = memref.load %arg4[%c0_43, %c0_44] : memref<1x1xf32, #tpu.memory_space<smem>>
      memref.store %85, %arg4[%c0_43, %c0_44] : memref<1x1xf32, #tpu.memory_space<smem>>
    } else {
    }
    return
  }
  func.func @transform_0(%arg0: i32) -> (i32, i32) {
    %c0_i32 = arith.constant 0 : i32
    %c0_i32_0 = arith.constant 0 : i32
    %c0_i32_1 = arith.constant 0 : i32
    return %c0_i32, %c0_i32_0 : i32, i32
  }
  func.func @transform_1(%arg0: i32) -> (i32, i32) {
    %c0_i32 = arith.constant 0 : i32
    %c0_i32_0 = arith.constant 0 : i32
    return %arg0, %c0_i32 : i32, i32
  }
  func.func @transform_2(%arg0: i32) -> (i32, i32) {
    %c0_i32 = arith.constant 0 : i32
    %c0_i32_0 = arith.constant 0 : i32
    %c0_i32_1 = arith.constant 0 : i32
    return %c0_i32, %c0_i32_0 : i32, i32
  }
  func.func @transform_3(%arg0: i32) -> (i32, i32) {
    %c0_i32 = arith.constant 0 : i32
    %c0_i32_0 = arith.constant 0 : i32
    %c0_i32_1 = arith.constant 0 : i32
    return %c0_i32, %c0_i32_0 : i32, i32
  }
}

</mosaic_0001>

<bundles_post_ra>
// kernel: tpu_custom_call.1
= control target key start
LH: loop header
LB: loop body
LE: loop exit
PB: predicated region body
PF: predicated region fallthrough
CT: control target
= control target key end

     0   :  { %vm57_vm0 = vcmask 261120   ;;  %s769_s0 = inlined_call_operand.vmem [shape: f32[8,32], index: 0, kind: input, shape index: {}]   ;;  %s770_s1 = inlined_call_operand.vmem [shape: f32[128,32], index: 1, kind: input, shape index: {}]   ;;  %s771_s2 = inlined_call_operand.vmem [shape: s32[8,1], index: 2, kind: input, shape index: {}]   ;;  %s772_s3 = inlined_call_operand.hbm [shape: f32[1,1], index: 3, kind: output, shape index: {}]  }
   0x1   :  { %v565_v0 = vld [vmem:[%s770_s1] sm:$0xff]  ;;  %v570_v1 = vld [vmem:[%s770_s1 + $0x10] sm:$0xff]  ;;  %v575_v2 = vld [vmem:[%s770_s1 + $0x8] sm:$0xff] }
   0x2   :  { %v41_v3 = vmul.f32 %v565_v0, %v565_v0  ;;  %v43_v4 = vmul.f32 %v570_v1, %v570_v1  ;;  %v42_v5 = vmul.f32 %v575_v2, %v575_v2  ;;  %v586_v6 = vld [vmem:[%s770_s1 + $0x18] sm:$0xff]  ;;  %v593_v8 = vld [vmem:[%s770_s1 + $0x28] sm:$0xff]  ;;  %v598_v9 = vld [vmem:[%s770_s1 + $0x20] sm:$0xff] }
   0x3   :  { %v44_v7 = vmul.f32 %v586_v6, %v586_v6  ;;  %v46_v14 = vmul.f32 %v593_v8, %v593_v8  ;;  %v45_v15 = vmul.f32 %v598_v9, %v598_v9 }
   0x4   :  { %v58_v10 = vsel %vm57_vm0, %v41_v3, 0.0  ;;  %v64_v11 = vsel %vm57_vm0, %v43_v4, 0.0  ;;  %v61_v12 = vsel %vm57_vm0, %v42_v5, 0.0 }
   0x5   :  { %59 = vadd.xlane.f32.xlu0 %v58_v10  ;;  %65 = vadd.xlane.f32.xlu1 %v64_v11  ;;  %v67_v13 = vsel %vm57_vm0, %v44_v7, 0.0 }
   0x6   :  { %8 = vsyncpa [#allocation6], 0  ;;  %v611_v16 = vld [vmem:[%s770_s1 + $0x38] sm:$0xff]  ;;  %v616_v17 = vld [vmem:[%s770_s1 + $0x30] sm:$0xff]  ;;  %v73_v18 = vsel %vm57_vm0, %v46_v14, 0.0  ;;  %v70_v19 = vsel %vm57_vm0, %v45_v15, 0.0 }
   0x7   :  { %v48_v20 = vmul.f32 %v611_v16, %v611_v16  ;;  %v47_v21 = vmul.f32 %v616_v17, %v616_v17  ;;  %v627_v22 = vld [vmem:[%s770_s1 + $0x48] sm:$0xff]  ;;  %v632_v23 = vld [vmem:[%s770_s1 + $0x40] sm:$0xff]  ;;  %v643_v28 = vld [vmem:[%s770_s1 + $0x58] sm:$0xff]  ;;  %v536_v48 = vmov 0.0|0.0   ;;  %vm19_vm1 = vcmask 7168   ;;  %s524_s22 = scalar_lea.hbm %s772_s3, 16 }
   0x8   :  { %v50_v26 = vmul.f32 %v627_v22, %v627_v22  ;;  %v49_v27 = vmul.f32 %v632_v23, %v632_v23  ;;  %v648_v29 = vld [vmem:[%s770_s1 + $0x50] sm:$0xff]  ;;  %v52_v32 = vmul.f32 %v643_v28, %v643_v28  ;;  %v659_v34 = vld [vmem:[%s770_s1 + $0x68] sm:$0xff]  ;;  %v664_v35 = vld [vmem:[%s770_s1 + $0x60] sm:$0xff]  ;;  %442 = vmatprep.subr.bf16.mxu0 %v536_v48  ;;  %v537_v49 = vmov 0.0   ;;  %p525_p0 = scmp.ne.s32.totalorder %s772_s3, %s524_s22  ;;  %p528_p1 = scmp.lt.u32.totalorder %s524_s22, %s772_s3 }
   0x9   :  { %62 = vadd.xlane.f32.xlu0 %v61_v12  ;;  %68 = vadd.xlane.f32.xlu1 %v67_v13  ;;  %v79_v24 = vsel %vm57_vm0, %v48_v20, 0.0  ;;  %v76_v25 = vsel %vm57_vm0, %v47_v21, 0.0  ;;  %v51_v33 = vmul.f32 %v648_v29, %v648_v29  ;;  %v54_v38 = vmul.f32 %v659_v34, %v659_v34  ;;  %v675_v40 = vld [vmem:[%s770_s1 + $0x78] sm:$0xff]  ;;  %v680_v41 = vld [vmem:[%s770_s1 + $0x70] sm:$0xff]  ;;  %21 = vst.msk [vmem:[#allocation3] sm:$0xff] %vm19_vm1, %v537_v49  ;;  %v696_v50 = vld [vmem:[%s771_s2] sm:$0xff] }
   0xa   :  { %v85_v30 = vsel %vm57_vm0, %v50_v26, 0.0  ;;  %v82_v31 = vsel %vm57_vm0, %v49_v27, 0.0  ;;  %v91_v36 = vsel %vm57_vm0, %v52_v32, 0.0  ;;  %v53_v39 = vmul.f32 %v664_v35, %v664_v35  ;;  %22 = vst.msk [vmem:[#allocation4] sm:$0xff] %vm19_vm1, %v537_v49  ;;  %vm703_vm3 = vmpackc.low %vm57_vm0, %vm57_vm0  ;;  %p530_p2 = pnand %p528_p1, %p525_p0 }
   0xb   :  { %v88_v37 = vsel %vm57_vm0, %v51_v33, 0.0  ;;  %v97_v42 = vsel %vm57_vm0, %v54_v38, 0.0  ;;  %v56_v44 = vmul.f32 %v675_v40, %v675_v40  ;;  %v55_v45 = vmul.f32 %v680_v41, %v680_v41 }
   0xc   :  { %v94_v43 = vsel %vm57_vm0, %v53_v39, 0.0  ;;  %vm538_vm2 = vmmov 0   ;;  %v539_v51 = vmov 0   ;;  %vm301_vm7 = vcmp.ge.s32.totalorder %v696_v50, 0 }
   0xd   :  { %74 = vadd.xlane.f32.xlu1 %v73_v18  ;;  %71 = vadd.xlane.f32.xlu0 %v70_v19  ;;  %v103_v46 = vsel %vm57_vm0, %v56_v44, 0.0  ;;  %v100_v47 = vsel %vm57_vm0, %v55_v45, 0.0  ;;  %vm304_vm8 = vcmp.lt.s32.totalorder %v696_v50, 128 }
   0xe   :  { %439 = vmatprep.mubr.msk.f32.mxu0 %vm538_vm2, %v537_v49  ;;  %482 = vset.pattern.permute.xlu0 %v539_v51  ;;  %vm305_vm9 = vmand %vm301_vm7, %vm304_vm8 }
   0xf   :  { %483 = vset.pattern.permute.xlu1 %v539_v51 }
  0x11   :  { %80 = vadd.xlane.f32.xlu1 %v79_v24  ;;  %77 = vadd.xlane.f32.xlu0 %v76_v25 }
  0x15   :  { %86 = vadd.xlane.f32.xlu1 %v85_v30  ;;  %83 = vadd.xlane.f32.xlu0 %v82_v31 }
  0x19   :  { %92 = vadd.xlane.f32.xlu1 %v91_v36  ;;  %89 = vadd.xlane.f32.xlu0 %v88_v37 }
  0x1d   :  { %98 = vadd.xlane.f32.xlu1 %v97_v42  ;;  %95 = vadd.xlane.f32.xlu0 %v94_v43 }
  0x21   :  { %104 = vadd.xlane.f32.xlu1 %v103_v46  ;;  %101 = vadd.xlane.f32.xlu0 %v100_v47 }
  0x37   :  { %283 = vperm.xlu0 %482, %v696_v50  }
  0x92   :  { %v60_v52 = vpop.xlane.xlu0 %59  ;;  %v66_v53 = vpop.xlane.xlu1 %65 }
  0x93   :  { %v106_v54 = vmax.f32 %v60_v52, 1e-24  ;;  %v108_v58 = vmax.f32 %v66_v53, 1e-24 }
  0x95   :  { %484 = vrsqrt.f32 %v106_v54 }
  0x96   :  { %v63_v55 = vpop.xlane.xlu0 %62  ;;  %v69_v56 = vpop.xlane.xlu1 %68 }
  0x97   :  { %v107_v57 = vmax.f32 %v63_v55, 1e-24  ;;  %v109_v59 = vmax.f32 %v69_v56, 1e-24 }
  0x99   :  { %486 = vrsqrt.f32 %v107_v57 }
  0x9a   :  { %v75_v60 = vpop.xlane.xlu1 %74  ;;  %488 = vrsqrt.f32 %v108_v58  ;;  %v72_v61 = vpop.xlane.xlu0 %71 }
  0x9b   :  { %490 = vrsqrt.f32 %v109_v59  ;;  %v111_v62 = vmax.f32 %v75_v60, 1e-24  ;;  %v110_v63 = vmax.f32 %v72_v61, 1e-24 }
  0x9d   :  { %492 = vrsqrt.f32 %v111_v62 }
  0x9e   :  { %494 = vrsqrt.f32 %v110_v63  ;;  %v81_v5 = vpop.xlane.xlu1 %80  ;;  %v78_v11 = vpop.xlane.xlu0 %77 }
  0x9f   :  { %v485_v3 = vpop.eup %484  ;;  %v113_v15 = vmax.f32 %v81_v5, 1e-24  ;;  %v112_v19 = vmax.f32 %v78_v11, 1e-24 }
  0xa0   :  { %v138_v7 = vmul.f32 %v485_v3, %v565_v0 }
  0xa1   :  { %496 = vrsqrt.f32 %v113_v15 }
  0xa2   :  { %498 = vrsqrt.f32 %v112_v19  ;;  %v87_v20 = vpop.xlane.xlu1 %86  ;;  %v84_v24 = vpop.xlane.xlu0 %83 }
  0xa3   :  { %v487_v4 = vpop.eup %486  ;;  %v115_v27 = vmax.f32 %v87_v20, 1e-24  ;;  %v114_v30 = vmax.f32 %v84_v24, 1e-24 }
  0xa4   :  { %v139_v10 = vmul.f32 %v487_v4, %v575_v2  ;;  %v489_v13 = vpop.eup %488 }
  0xa5   :  { %v491_v18 = vpop.eup %490  ;;  %v140_v0 = vmul.f32 %v489_v13, %v570_v1  ;;  %500 = vrsqrt.f32 %v115_v27 }
  0xa6   :  { %v443_v14 = vpack.c.bf16 %v139_v10, %v138_v7  ;;  %v141_v2 = vmul.f32 %v491_v18, %v586_v6  ;;  %502 = vrsqrt.f32 %v114_v30  ;;  %v93_v1 = vpop.xlane.xlu1 %92  ;;  %v90_v36 = vpop.xlane.xlu0 %89 }
  0xa7   :  { %v493_v21 = vpop.eup %492  ;;  %v117_v38 = vmax.f32 %v93_v1, 1e-24  ;;  %v116_v39 = vmax.f32 %v90_v36, 1e-24  ;;  %v540_v1 = vmov -inf  }
  0xa8   :  { %445 = vmatpush3.bf16.xpose.msk.msra.mxu0 %vm703_vm3, %v443_v14  ;;  %v495_v25 = vpop.eup %494  ;;  %v447_v26 = vpack.c.bf16 %v141_v2, %v140_v0  ;;  %v143_v32 = vmul.f32 %v493_v21, %v593_v8  ;;  %20 = vst.msk [vmem:[#allocation2] sm:$0xff] %vm19_vm1, %v540_v1 }
  0xa9   :  { %446 = vmatprep.subr.bf16.mxu0 %v536_v48  ;;  %v142_v31 = vmul.f32 %v495_v25, %v598_v9  ;;  %504 = vrsqrt.f32 %v117_v38  ;;  %v306_v25 = vld [vmem:[#allocation4] sm:$0xff] }
  0xaa   :  { %506 = vrsqrt.f32 %v116_v39  ;;  %v99_v8 = vpop.xlane.xlu1 %98  ;;  %v96_v45 = vpop.xlane.xlu0 %95 }
  0xab   :  { %v497_v6 = vpop.eup %496  ;;  %v451_v33 = vpack.c.bf16 %v143_v32, %v142_v31  ;;  %v119_v47 = vmax.f32 %v99_v8, 1e-24  ;;  %v118_v49 = vmax.f32 %v96_v45, 1e-24 }
  0xac   :  { %v499_v37 = vpop.eup %498  ;;  %v145_v9 = vmul.f32 %v497_v6, %v611_v16 }
  0xad   :  { %v144_v42 = vmul.f32 %v499_v37, %v616_v17  ;;  %508 = vrsqrt.f32 %v119_v47 }
  0xae   :  { %510 = vrsqrt.f32 %v118_v49  ;;  %v105_v16 = vpop.xlane.xlu1 %104  ;;  %v102_v54 = vpop.xlane.xlu0 %101 }
  0xaf   :  { %v501_v43 = vpop.eup %500  ;;  %v455_v44 = vpack.c.bf16 %v145_v9, %v144_v42  ;;  %v121_v56 = vmax.f32 %v105_v16, 1e-24  ;;  %v120_v57 = vmax.f32 %v102_v54, 1e-24  ;;  %v314_v6 = vld [vmem:[#allocation2] sm:$0xff] }
  0xb0   :  { %449 = vmatpush3.bf16.xpose.msk.msra.mxu0 %vm703_vm3, %v447_v26  ;;  %v503_v46 = vpop.eup %502  ;;  %v147_v17 = vmul.f32 %v501_v43, %v627_v22  ;;  %v321_v43 = vld [vmem:[#allocation3] sm:$0xff] }
  0xb1   :  { %450 = vmatprep.subr.bf16.mxu0 %v536_v48  ;;  %v146_v51 = vmul.f32 %v503_v46, %v632_v23  ;;  %512 = vrsqrt.f32 %v121_v56 }
  0xb2   :  { %514 = vrsqrt.f32 %v120_v57 }
  0xb3   :  { %v505_v52 = vpop.eup %504  ;;  %v459_v53 = vpack.c.bf16 %v147_v17, %v146_v51 }
  0xb4   :  { %v507_v55 = vpop.eup %506  ;;  %v149_v23 = vmul.f32 %v505_v52, %v643_v28 }
  0xb5   :  { %v148_v58 = vmul.f32 %v507_v55, %v648_v29 }
  0xb6   :  { %v284_v10 = vpop.permute.xlu0 %283 }
  0xb7   :  { %v509_v22 = vpop.eup %508  ;;  %v463_v59 = vpack.c.bf16 %v149_v23, %v148_v58 }
  0xb8   :  { %453 = vmatpush3.bf16.xpose.msk.msra.mxu0 %vm703_vm3, %v451_v33  ;;  %v511_v60 = vpop.eup %510  ;;  %v151_v62 = vmul.f32 %v509_v22, %v659_v34  ;;  %v23_v34 = vld [vmem:[%s769_s0] sm:$0xff] }
  0xb9   :  { %454 = vmatprep.subr.bf16.mxu0 %v536_v48  ;;  %v150_v61 = vmul.f32 %v511_v60, %v664_v35  ;;  %v278_v35 = vlaneseq }
  0xbb   :  { %v513_v63 = vpop.eup %512  ;;  %v467_v29 = vpack.c.bf16 %v151_v62, %v150_v61  ;;  %v279_v7 = vand.u32 127, %v278_v35 }
  0xbc   :  { %v515_v3 = vpop.eup %514  ;;  %v153_v4 = vmul.f32 %v513_v63, %v675_v40 }
  0xbd   :  { %v152_v28 = vmul.f32 %v515_v3, %v680_v41  ;;  %vm285_vm4 = vcmp.eq.s32.totalorder %v279_v7, %v284_v10 }
  0xbf   :  { %v471_v5 = vpack.c.bf16 %v153_v4, %v152_v28 }
  0xc0   :  { %457 = vmatpush3.bf16.xpose.msk.msra.mxu0 %vm703_vm3, %v455_v44 }
  0xc1   :  { %458 = vmatprep.subr.bf16.mxu0 %v536_v48 }
  0xc8   :  { %461 = vmatpush3.bf16.xpose.msk.msra.mxu0 %vm703_vm3, %v459_v53 }
  0xc9   :  { %462 = vmatprep.subr.bf16.mxu0 %v536_v48 }
  0xd0   :  { %465 = vmatpush3.bf16.xpose.msk.msra.mxu0 %vm703_vm3, %v463_v59 }
  0xd1   :  { %466 = vmatprep.subr.bf16.mxu0 %v536_v48 }
  0xd8   :  { %469 = vmatpush3.bf16.xpose.msk.msra.mxu0 %vm703_vm3, %v467_v29 }
  0xd9   :  { %470 = vmatprep.subr.bf16.mxu0 %v536_v48 }
  0xe0   :  { %473 = vmatpush3.bf16.xpose.msk.msra.mxu0 %vm703_vm3, %v471_v5 }
  0xe7   :  { %440 = vmatmul.mubr.msk.f32.vlgmr.msra.gmra.mrb[0].mxu0 %vm57_vm0, %v23_v34 }
 0x1ba   :  { %v271_v11 = vpop.f32.mrb[0].mxu0 }
 0x1bb   :  { %v389_v41 = vclamps-f32 %v271_v11, 0.9999999  ;;  %v441_v13 = vpop.f32.mrb[1].mxu0 }
 0x1bd   :  { %v286_v40 = vsel %vm285_vm4, %v389_v41, 0.0 }
 0x1be   :  { %287 = vadd.xlane.f32.xlu1 %v286_v40 }
 0x24b   :  { %v288_v48 = vpop.xlane.xlu1 %287 }
 0x24c   :  { %v290_v14 = vmul.f32 %v288_v48, %v288_v48  ;;  %v289_v20 = vmul.f32 0.7648422, %v288_v48 }
 0x24e   :  { %v291_v12 = vsub.f32 1.0, %v290_v14 }
 0x250   :  { %516 = vrsqrt.f32 %v291_v12  ;;  %vm294_vm5 = vcmp.eq.f32.partialorder %v291_v12, inf  ;;  %v297_v19 = vand.u32 2147483648, %v291_v12  ;;  %vm296_vm6 = vcmp.eq.f32.partialorder %v291_v12, 0.0 }
 0x25a   :  { %v517_v15 = vpop.eup %516 }
 0x25b   :  { %v293_v18 = vmul.f32 %v517_v15, %v291_v12 }
 0x25d   :  { %v295_v0 = vsel %vm294_vm5, %v291_v12, %v293_v18 }
 0x25e   :  { %v298_v2 = vsel %vm296_vm6, %v297_v19, %v295_v0 }
 0x25f   :  { %v299_v21 = vmul.f32 0.64421767, %v298_v2 }
 0x261   :  { %v300_v24 = vsub.f32 %v289_v20, %v299_v21 }
 0x263   :  { %v307_v26 = vmul.f32 64.0, %v300_v24  ;;  %v312_v27 = vsel %vm285_vm4, %v300_v24, %v389_v41 }
 0x264   :  { %v313_v30 = vmul.f32 64.0, %v312_v27 }
 0x265   :  { %v308_v31 = vsel %vm305_vm9, %v307_v26, 0.0 }
 0x266   :  { %v309_v32 = vadd.f32 %v308_v31, %v306_v25  ;;  %315 = vmax.xlane.f32.xlu1 %v313_v30 }
 0x268   :  { %311 = vst.msk [vmem:[#allocation4] sm:$0xff] %vm19_vm1, %v309_v32 }
 0x26f   :  { %v344_v52 = vld [vmem:[#allocation4] sm:$0xff] }
 0x2f3   :  { %v316_v33 = vpop.xlane.xlu1 %315 }
 0x2f4   :  { %v317_v50 = vmax.f32 %v314_v6, %v316_v33 }
 0x2f6   :  { %v318_v36 = vsub.f32 %v314_v6, %v317_v50  ;;  %335 = vst.msk [vmem:[#allocation2] sm:$0xff] %vm19_vm1, %v317_v50  ;;  %325 = vperm.xlu1 %483, %v317_v50  }
 0x2f8   :  { %v319_v9 = vmul.f32 1.442695, %v318_v36 }
 0x2fd   :  { %v339_v17 = vld [vmem:[#allocation2] sm:$0xff] }
 0x375   :  { %v326_v37 = vpop.permute.xlu1 %325 }
 0x376   :  { %v328_v38 = vsub.f32 %v313_v30, %v326_v37 }
 0x378   :  { %v329_v39 = vmul.f32 1.442695, %v328_v38 }
 0x37a   :  { %518 = vpow2.f32 %v329_v39 }
 0x37b   :  { %520 = vpow2.f32 %v319_v9 }
 0x384   :  { %v519_v42 = vpop.eup %518 }
 0x385   :  { %331 = vadd.xlane.f32.xlu1 %v519_v42  ;;  %v521_v8 = vpop.eup %520 }
 0x386   :  { %v322_v44 = vmul.f32 %v521_v8, %v321_v43 }
 0x412   :  { %v332_v45 = vpop.xlane.xlu1 %331 }
 0x413   :  { %v333_v46 = vadd.f32 %v332_v45, %v322_v44 }
 0x415   :  { %334 = vst.msk [vmem:[#allocation3] sm:$0xff] %vm19_vm1, %v333_v46 }
 0x41c   :  { %v340_v47 = vld [vmem:[#allocation3] sm:$0xff] }
 0x41d   :  { %522 = vlog2.f32 %v340_v47 }
 0x427   :  { %v523_v49 = vpop.eup %522 }
 0x428   :  { %v342_v51 = vmul.f32 0.6931472, %v523_v49 }
 0x42a   :  { %v343_v16 = vadd.f32 %v342_v51, %v339_v17 }
 0x42c   :  { %v345_v53 = vsub.f32 %v343_v16, %v344_v52 }
 0x42e   :  { %v346_v54 = vsel %vm19_vm1, %v345_v53, 0.0 }
 0x42f   :  { %347 = vadd.xlane.f32.xlu0 %v346_v54 }
 0x4bc   :  { %v348_v55 = vpop.xlane.xlu0 %347 }
 0x4bd   :  { %v349_v56 = vrot.slane %v348_v55, 4 }
 0x4bf   :  { %v350_v57 = vadd.f32 %v349_v56, %v348_v55 }
 0x4c1   :  { %v351_v58 = vrot.slane %v350_v57, 2 }
 0x4c3   :  { %v352_v23 = vadd.f32 %v351_v58, %v350_v57 }
 0x4c5   :  { %v353_v22 = vrot.slane %v352_v23, 1 }
 0x4c7   :  { %v354_v59 = vadd.f32 %v353_v22, %v352_v23 }
 0x4c9   :  { %474 = vpush %v354_v59 }
 0x4fa   :  { %s475_s0 = spop %474 }
 0x4fb   :  { %s356_s19 = smul.f32 0.125, %s475_s0 }
 0x4fd   :  { %358 = sst [smem:[#allocation5]] %s356_s19 }
 0x4fe   :  { %533 = shalt.err (!%p530_p2)
}
 0x4ff   :  { %s541_s27 = smov [#allocation5]  }
 0x500   :  { %366 = dma.smem_to_hbm %s541_s27, 16, %s772_s3, [#allocation6]  }
 0x501   :  { %534 = dma.done.wait [#allocation6], 16  }
 0x502   :  { %535 = vsyncadd [#allocation6], 4294967280 }
 0x503   :  { %370 = sfence }
 0x504   :  { %371 = vsyncpa [#allocation6], 1 }

</bundles_post_ra>
